<compile_context>
chip_gen: v7x
topology: tpu7x:2x2x1
jax: 0.10.0
libtpu: 0.0.40
codegen_flags: <defaults>
</compile_context>

<pallas_src>
import jax
import jax.numpy as jnp
from jax.experimental import pallas as pl
from jax.experimental.pallas import tpu as pltpu

_LANE = 128                  # TPU lane width
_MAX_TILE_B = 131072         # max lanes per block (~3 MiB input / block, VMEM-safe on all gens)
_MEGACORE_SPLIT_MIN = 32768  # only force a 2-way split if each half still has >= this many lanes


def _cdiv(a, b):
    return (a + b - 1) // b


def _round_up(x, m):
    return _cdiv(x, m) * m


def _pick_tile(batch):
    """Lane-axis block size: multiple of 128, large enough to amortize per-step
    overhead, small enough for scoped VMEM, and >=2 blocks for megacore when
    the batch is big enough."""
    b_lanes = _round_up(batch, _LANE)
    n_blocks = _cdiv(b_lanes, _MAX_TILE_B)
    if n_blocks == 1 and b_lanes >= 2 * _MEGACORE_SPLIT_MIN:
        n_blocks = 2  # let dimension_semantics=("parallel",) use both v7x TensorCores
    return _round_up(_cdiv(b_lanes, n_blocks), _LANE)


def _lv_kernel(theta_ref, prey_ref, pred_ref, dprey_ref, dpred_ref):
    # theta_ref: (4, TILE_B)   rows = theta[...,0..3], lanes = batch
    # prey_ref / pred_ref: (1, TILE_B)
    # dprey_ref / dpred_ref: (1, TILE_B)
    th = theta_ref[...]          # single whole-tile load; rows sliced in-register
    prey = prey_ref[...]
    pred = pred_ref[...]

    prey_pred = prey * pred
    # Two direct whole-block stores (no concatenate / sublane retile).
    dprey_ref[...] = th[0:1, :] * prey - th[1:2, :] * prey_pred
    dpred_ref[...] = th[3:4, :] * prey_pred - th[2:3, :] * pred


def lotka_volterra_ode(theta, t, state):
    """Pallas-backed equivalent of LotkaVolterraODE.forward.

    theta: (B, 4) (or (4,)) float parameters
    t:     scalar (unused, kept for API parity with the torch module)
    state: tuple (prey, predator), each (B,)
    returns: (dprey, dpredator), each (B,)
    """
    del t  # unused in the reference forward pass
    prey, predator = state
    B = prey.shape[0]
    dtype = prey.dtype

    if theta.ndim == 1:
        theta = jnp.broadcast_to(theta[None, :], (B, 4))

    # In an integrator loop this transpose (16*B bytes) would be hoisted out of
    # the per-step path; prey/pred reshapes below are metadata-only.
    theta_t = jnp.transpose(theta).astype(dtype)       # (4, B), lanes = batch
    prey2 = prey.reshape(1, B)
    pred2 = predator.reshape(1, B)

    tile_b = _pick_tile(B)
    grid_n = _cdiv(B, tile_b)   # ragged tail block handled by Pallas masking

    dprey2, dpred2 = pl.pallas_call(
        _lv_kernel,
        out_shape=(
            jax.ShapeDtypeStruct((1, B), dtype),
            jax.ShapeDtypeStruct((1, B), dtype),
        ),
        grid=(grid_n,),
        in_specs=[
            pl.BlockSpec((4, tile_b), lambda i: (0, i)),
            pl.BlockSpec((1, tile_b), lambda i: (0, i)),
            pl.BlockSpec((1, tile_b), lambda i: (0, i)),
        ],
        out_specs=(
            pl.BlockSpec((1, tile_b), lambda i: (0, i)),
            pl.BlockSpec((1, tile_b), lambda i: (0, i)),
        ),
        compiler_params=pltpu.CompilerParams(
            dimension_semantics=("parallel",),
        ),
    )(theta_t, prey2, pred2)

    return dprey2.reshape(B), dpred2.reshape(B)


def _reference(theta, prey, predator):
    dprey = theta[:, 0] * prey - theta[:, 1] * prey * predator
    dpred = -theta[:, 2] * predator + theta[:, 3] * prey * predator
    return dprey, dpred


if __name__ == "__main__":
    B = 200  # deliberately NOT a multiple of 128 to exercise the ragged tail block
    key = jax.random.PRNGKey(0)
    k_theta, k_prey, k_pred = jax.random.split(key, 3)

    # Deterministic, positive parameters (typical Lotka-Volterra priors are log-normal).
    theta = jnp.exp(0.25 * jax.random.normal(k_theta, (B, 4), dtype=jnp.float32))
    prey = jnp.abs(jax.random.normal(k_prey, (B,), dtype=jnp.float32)) + 0.5
    predator = jnp.abs(jax.random.normal(k_pred, (B,), dtype=jnp.float32)) + 0.5
    t = jnp.float32(0.0)

    dprey, dpred = lotka_volterra_ode(theta, t, (prey, predator))
    jax.block_until_ready((dprey, dpred))

    # Correctness check against a plain-JAX reference.
    ref_dprey, ref_dpred = _reference(theta, prey, predator)
    assert dprey.shape == (B,) and dpred.shape == (B,)
    assert jnp.allclose(dprey, ref_dprey, rtol=1e-6, atol=1e-6)
    assert jnp.allclose(dpred, ref_dpred, rtol=1e-6, atol=1e-6)

    print("KERNEL_OK")
</pallas_src>

<mosaic_0001>
module attributes {stable_mosaic.version = 11 : i64} {
  func.func @_lv_kernel(%arg0: i32, %arg1: memref<4x256xf32, #tpu.memory_space<vmem>>, %arg2: memref<1x256xf32, #tpu.memory_space<vmem>>, %arg3: memref<1x256xf32, #tpu.memory_space<vmem>>, %arg4: memref<1x256xf32, #tpu.memory_space<vmem>>, %arg5: memref<1x256xf32, #tpu.memory_space<vmem>>) attributes {dimension_semantics = [#tpu.dimension_semantics<parallel>], iteration_bounds = array<i64: 1>, scalar_prefetch = 0 : i64, scratch_operands = 0 : i64, tpu.core_type = #tpu.core_type<tc>, window_params = [{transform_indices = @transform_0, window_bounds = array<i64: 4, 256>}, {transform_indices = @transform_1, window_bounds = array<i64: 1, 256>}, {transform_indices = @transform_2, window_bounds = array<i64: 1, 256>}, {transform_indices = @transform_3, window_bounds = array<i64: 1, 256>}, {transform_indices = @transform_4, window_bounds = array<i64: 1, 256>}]} {
    %c0 = arith.constant 0 : index
    %c0_0 = arith.constant 0 : index
    %0 = vector.load %arg1[%c0, %c0_0] : memref<4x256xf32, #tpu.memory_space<vmem>>, vector<4x256xf32>
    %c0_1 = arith.constant 0 : index
    %c0_2 = arith.constant 0 : index
    %1 = vector.load %arg2[%c0_1, %c0_2] : memref<1x256xf32, #tpu.memory_space<vmem>>, vector<1x256xf32>
    %c0_3 = arith.constant 0 : index
    %c0_4 = arith.constant 0 : index
    %2 = vector.load %arg3[%c0_3, %c0_4] : memref<1x256xf32, #tpu.memory_space<vmem>>, vector<1x256xf32>
    %3 = arith.mulf %1, %2 : vector<1x256xf32>
    %4 = vector.extract_strided_slice %0 {offsets = [0, 0], sizes = [1, 256], strides = [1, 1]} : vector<4x256xf32> to vector<1x256xf32>
    %5 = arith.mulf %4, %1 : vector<1x256xf32>
    %6 = vector.extract_strided_slice %0 {offsets = [1, 0], sizes = [1, 256], strides = [1, 1]} : vector<4x256xf32> to vector<1x256xf32>
    %7 = arith.mulf %6, %3 : vector<1x256xf32>
    %8 = arith.subf %5, %7 : vector<1x256xf32>
    %c0_5 = arith.constant 0 : index
    %c0_6 = arith.constant 0 : index
    %9 = vector.load %arg4[%c0_5, %c0_6] : memref<1x256xf32, #tpu.memory_space<vmem>>, vector<1x256xf32>
    tpu.vector_store %arg4[%c0_5, %c0_6], %8 {strides = array<i32>} : memref<1x256xf32, #tpu.memory_space<vmem>>, vector<1x256xf32>,
    %10 = vector.extract_strided_slice %0 {offsets = [3, 0], sizes = [1, 256], strides = [1, 1]} : vector<4x256xf32> to vector<1x256xf32>
    %11 = arith.mulf %10, %3 : vector<1x256xf32>
    %12 = vector.extract_strided_slice %0 {offsets = [2, 0], sizes = [1, 256], strides = [1, 1]} : vector<4x256xf32> to vector<1x256xf32>
    %13 = arith.mulf %12, %2 : vector<1x256xf32>
    %14 = arith.subf %11, %13 : vector<1x256xf32>
    %c0_7 = arith.constant 0 : index
    %c0_8 = arith.constant 0 : index
    %15 = vector.load %arg5[%c0_7, %c0_8] : memref<1x256xf32, #tpu.memory_space<vmem>>, vector<1x256xf32>
    tpu.vector_store %arg5[%c0_7, %c0_8], %14 {strides = array<i32>} : memref<1x256xf32, #tpu.memory_space<vmem>>, vector<1x256xf32>,
    return
  }
  func.func @transform_0(%arg0: i32) -> (i32, i32) {
    %c0_i32 = arith.constant 0 : i32
    %c0_i32_0 = arith.constant 0 : i32
    return %c0_i32, %arg0 : i32, i32
  }
  func.func @transform_1(%arg0: i32) -> (i32, i32) {
    %c0_i32 = arith.constant 0 : i32
    %c0_i32_0 = arith.constant 0 : i32
    return %c0_i32, %arg0 : i32, i32
  }
  func.func @transform_2(%arg0: i32) -> (i32, i32) {
    %c0_i32 = arith.constant 0 : i32
    %c0_i32_0 = arith.constant 0 : i32
    return %c0_i32, %arg0 : i32, i32
  }
  func.func @transform_3(%arg0: i32) -> (i32, i32) {
    %c0_i32 = arith.constant 0 : i32
    %c0_i32_0 = arith.constant 0 : i32
    return %c0_i32, %arg0 : i32, i32
  }
  func.func @transform_4(%arg0: i32) -> (i32, i32) {
    %c0_i32 = arith.constant 0 : i32
    %c0_i32_0 = arith.constant 0 : i32
    return %c0_i32, %arg0 : i32, i32
  }
}

</mosaic_0001>

<bundles_post_ra>
// kernel: tpu_custom_call.1
= control target key start
LH: loop header
LB: loop body
LE: loop exit
PB: predicated region body
PF: predicated region fallthrough
CT: control target
= control target key end

     0   :  { %10 = vsyncpa [#allocation3], 0  ;;  %s300_s0 = inlined_call_operand.hbm [shape: f32[4,200], index: 0, kind: input, shape index: {}]   ;;  %s301_s1 = inlined_call_operand.vmem [shape: f32[1,200], index: 1, kind: input, shape index: {}]   ;;  %s302_s2 = inlined_call_operand.vmem [shape: f32[1,200], index: 2, kind: input, shape index: {}]   ;;  %s303_s3 = inlined_call_operand.hbm [shape: f32[1,200], index: 3, kind: output, shape index: {0}]   ;;  %s304_s4 = inlined_call_operand.hbm [shape: f32[1,200], index: 4, kind: output, shape index: {1}]  }
   0x1   :  { %11 = vsyncpa [#allocation4], 0 }
   0x2   :  { %12 = vsyncpa [#allocation7], 0  ;;  %s220_s15 = smov [#allocation2]   ;;  %s148_s19 = scalar_lea.hbm %s300_s0, 128 }
   0x3   :  { %s19_s16 = sshll.u32 %s220_s15, 4  ;;  %p149_p0 = scmp.ne.s32.totalorder %s300_s0, %s148_s19  ;;  %s20_s16 = int_to_ptr.vmem [resolvable:$true] %s19_s16 }
   0x4   :  { %p152_p1 = scmp.lt.u32.totalorder %s148_s19, %s300_s0 }
   0x6   :  { %p154_p2 = pnand %p152_p1, %p149_p0 }
   0x8   :  { %157 = shalt.err (!%p154_p2)
}
   0x9   :  { %s158_s24 = scalar_lea.vmem %s20_s16, 128  ;;  %p163_p4 = scmp.lt.s32.totalorder %s20_s16, %s20_s16 }
   0xa   :  { %p159_p3 = scmp.ne.s32.totalorder %s20_s16, %s158_s24  ;;  %p164_p5 = scmp.lt.s32.totalorder %s158_s24, %s158_s24 }
   0xc   :  { %p165_p6 = por %p164_p5, %p163_p4 }
   0xe   :  { %p166_p7 = pnand %p165_p6, %p159_p3 }
  0x10   :  { %169 = shalt.err (!%p166_p7)
}
  0x11   :  { %22 = dma.hbm_to_vmem [thread:$0]  %s300_s0, 128, %s20_s16, [#allocation3]  }
  0x12   :  { %214 = dma.done.wait [#allocation3], 128  }
  0x13   :  { %215 = vsyncadd [#allocation3], 4294967168  ;;  %v38_v0 = vlaneseq  ;;  %v221_v1 = vmov 286326784   ;;  %v222_v5 = vmov 1966171168   ;;  %v30_v8 = vld [vmem:[#allocation2] sm:$0xff] }
  0x14   :  { %v36_v2 = vunpack.c.l.s4 %v221_v1  ;;  %v61_v6 = vunpack.c.l.s4 %v222_v5  ;;  %v31_v9 = vld [vmem:[%s301_s1] sm:$0x3]  ;;  %s223_s0 = smov [#allocation5]  }
  0x15   :  { %v39_v3 = vshrl.u32 %v38_v0, 7  ;;  %v32_v10 = vld [vmem:[%s302_s2] sm:$0x3]  ;;  %s119_s1 = sshll.u32 %s223_s0, 4  ;;  %vm268_vm0 = vcmp.lt.s32.totalorder %v38_v0, 256  ;;  %s224_s2 = smov [#allocation6]   ;;  %s120_s1 = int_to_ptr.vmem [resolvable:$true] %s119_s1 }
  0x16   :  { %v37_v4 = vunpack.c.0.s8 %v36_v2  ;;  %v33_v11 = vmul.f32 %v32_v10, %v31_v9  ;;  %v62_v13 = vunpack.c.0.s8 %v61_v6  ;;  %s129_s5 = sshll.u32 %s224_s2, 4  ;;  %s170_s6 = scalar_lea.vmem %s120_s1, 32  ;;  %s130_s5 = int_to_ptr.vmem [resolvable:$true] %s129_s5 }
  0x17   :  { %p171_p8 = scmp.ne.s32.totalorder %s120_s1, %s170_s6  ;;  %p175_p9 = scmp.lt.s32.totalorder %s120_s1, %s120_s1 }
  0x18   :  { %v40_v7 = vsub.s32 %v37_v4, %v39_v3  ;;  %v65_v19 = vsub.s32 %v62_v13, %v39_v3  ;;  %p176_p10 = scmp.lt.s32.totalorder %s170_s6, %s170_s6 }
  0x1a   :  { %v41_v12 = vrot.slane %v31_v9, %v40_v7  ;;  %v87_v14 = vrot.slane %v32_v10, %v40_v7  ;;  %v51_v15 = vrot.slane %v33_v11, %v40_v7  ;;  %p177_p11 = por %p176_p10, %p175_p9 }
  0x1c   :  { %v89_v16 = vmul.f32 %v87_v14, %v30_v8  ;;  %v43_v17 = vmul.f32 %v41_v12, %v30_v8  ;;  %v53_v18 = vmul.f32 %v51_v15, %v30_v8  ;;  %p178_p12 = pnand %p177_p11, %p171_p8 }
  0x1e   :  { %v91_v20 = vrot.slane %v89_v16, 7  ;;  %v142_v21 = vrot.slane %v53_v18, 9 }
  0x20   :  { %v93_v22 = vsub.f32 %v53_v18, %v91_v20  ;;  %v58_v23 = vsub.f32 %v43_v17, %v142_v21 }
  0x22   :  { %v101_v24 = vrot.slane %v93_v22, %v65_v19  ;;  %v66_v25 = vrot.slane %v58_v23, %v65_v19 }
  0x24   :  { %v102_v26 = vcombine.high %v101_v24, %v101_v24  ;;  %v73_v28 = vrot.slane %v66_v25, %v65_v19 }
  0x26   :  { %v109_v29 = vrot.slane %v102_v26, %v65_v19  ;;  %79 = vst.msk [vmem:[#allocation5] sm:$0x3] %vm268_vm0, %v73_v28 }
  0x28   :  { %v110_v30 = vcombine.high %v109_v29, %v109_v29 }
  0x29   :  { %181 = shalt.err (!%p178_p12)
}
  0x2a   :  { %s182_s9 = scalar_lea.hbm %s303_s3, 32 }
  0x2b   :  { %p183_p13 = scmp.ne.s32.totalorder %s303_s3, %s182_s9  ;;  %p186_p0 = scmp.lt.u32.totalorder %s182_s9, %s303_s3 }
  0x2d   :  { %p188_p1 = pnand %p186_p0, %p183_p13 }
  0x2f   :  { %191 = shalt.err (!%p188_p1)
}
  0x30   :  { %122 = dma.vmem_to_hbm [thread:$0]  %s120_s1, 32, %s303_s3, [#allocation4]   ;;  %112 = vst.msk [vmem:[#allocation6] sm:$0x3] %vm268_vm0, %v110_v30 }
  0x31   :  { %s192_s16 = scalar_lea.vmem %s130_s5, 32  ;;  %p197_p3 = scmp.lt.s32.totalorder %s130_s5, %s130_s5 }
  0x32   :  { %p193_p2 = scmp.ne.s32.totalorder %s130_s5, %s192_s16  ;;  %p198_p4 = scmp.lt.s32.totalorder %s192_s16, %s192_s16 }
  0x34   :  { %p199_p5 = por %p198_p4, %p197_p3 }
  0x36   :  { %p200_p6 = pnand %p199_p5, %p193_p2 }
  0x38   :  { %203 = shalt.err (!%p200_p6)
}
  0x39   :  { %s204_s19 = scalar_lea.hbm %s304_s4, 32 }
  0x3a   :  { %p205_p7 = scmp.ne.s32.totalorder %s304_s4, %s204_s19  ;;  %p208_p8 = scmp.lt.u32.totalorder %s204_s19, %s304_s4 }
  0x3c   :  { %p210_p9 = pnand %p208_p8, %p205_p7 }
  0x3e   :  { %213 = shalt.err (!%p210_p9)
}
  0x3f   :  { %132 = dma.vmem_to_hbm [thread:$0]  %s130_s5, 32, %s304_s4, [#allocation7]  }
  0x40   :  { %216 = dma.done.wait [#allocation4], 32  }
  0x41   :  { %217 = vsyncadd [#allocation4], 4294967264 }
  0x42   :  { %218 = dma.done.wait [#allocation7], 32  }
  0x43   :  { %219 = vsyncadd [#allocation7], 4294967264 }
  0x44   :  { %139 = vsyncpa [#allocation3], 1 }
  0x45   :  { %140 = vsyncpa [#allocation4], 1 }
  0x46   :  { %141 = vsyncpa [#allocation7], 1 }

</bundles_post_ra>
